<compile_context>
chip_gen: v5e
topology: v5e:2x2
jax: 0.10.0
libtpu: 0.0.40
codegen_flags: <defaults>
</compile_context>

<pallas_src>
import jax
import jax.numpy as jnp
import numpy as np
from jax.experimental import pallas as pl
from jax.experimental.pallas import tpu as pltpu


def _warp_kernel(tinv_ref, pc_ref, out_ref):
    # tinv_ref: SMEM (1, 4, 4) f32   -- inverse(T) for this batch element
    # pc_ref:   VMEM (1, 3, TR, L) f32 -- x/y/z as dense (sublane, lane) slabs
    # out_ref:  VMEM (1, 3, TR, L) f32
    # Hoist the 16 scalar loads out of the arithmetic.
    t00 = tinv_ref[0, 0, 0]; t01 = tinv_ref[0, 0, 1]
    t02 = tinv_ref[0, 0, 2]; t03 = tinv_ref[0, 0, 3]
    t10 = tinv_ref[0, 1, 0]; t11 = tinv_ref[0, 1, 1]
    t12 = tinv_ref[0, 1, 2]; t13 = tinv_ref[0, 1, 3]
    t20 = tinv_ref[0, 2, 0]; t21 = tinv_ref[0, 2, 1]
    t22 = tinv_ref[0, 2, 2]; t23 = tinv_ref[0, 2, 3]
    t30 = tinv_ref[0, 3, 0]; t31 = tinv_ref[0, 3, 1]
    t32 = tinv_ref[0, 3, 2]; t33 = tinv_ref[0, 3, 3]

    x = pc_ref[0, 0]          # (TR, L)
    y = pc_ref[0, 1]
    z = pc_ref[0, 2]

    w = t30 * x + t31 * y + t32 * z + t33          # homogeneous w (+ 1 * t33)
    inv_w = pl.reciprocal(w, approx=False)         # EUP slot, not VALU divide

    out_ref[0, 0] = (t00 * x + t01 * y + t02 * z + t03) * inv_w
    out_ref[0, 1] = (t10 * x + t11 * y + t12 * z + t13) * inv_w
    out_ref[0, 2] = (t20 * x + t21 * y + t22 * z + t23) * inv_w


def _choose_layout(N, H, W):
    """Pick (R, L) with R*L == N, L a multiple of 128 (lane-dense), preferring
    R a multiple of 8 (sublane-dense). Falls back to the native (H, W) layout
    (full-dim blocks) when N is not a multiple of 128."""
    for want_dense_sublanes in (True, False):
        for lane in (1024, 512, 256, 128):
            if N % lane == 0:
                rows = N // lane
                if (not want_dense_sublanes) or rows % 8 == 0:
                    return rows, lane
    return H, W


def _choose_tile_rows(R, L, target_bytes):
    """Largest TR (multiple of 8, dividing R) with 3*TR*L*4 <= target_bytes;
    fall back to TR = R (full-dim block is always legal)."""
    row_bytes = 3 * L * 4
    best = None
    tr = 8
    while tr <= R:
        if R % tr == 0 and tr * row_bytes <= target_bytes:
            best = tr
        tr += 8
    return best if best is not None else R


def coordinate_warper(bev_image_as_pointcloud, T, *,
                      target_tile_bytes=2 * 1024 * 1024):
    """Pallas equivalent of CoordinateWarper.forward.

    bev_image_as_pointcloud: (B, 3, H, W) float32
    T: (B, 4, 4) float32 homogeneous transform
    returns: (B, 3, H, W) float32
    """
    B, C, H, W = bev_image_as_pointcloud.shape
    assert C == 3
    N = H * W

    # Re-group the contiguous spatial dims into a (sublane, lane) slab.
    R, L = _choose_layout(N, H, W)
    pc = bev_image_as_pointcloud.astype(jnp.float32).reshape(B, 3, R, L)

    TR = _choose_tile_rows(R, L, target_tile_bytes)
    tile_bytes = 3 * TR * L * 4

    # Tiny 4x4 batched inverse: plain-JAX glue.
    t_inv = jnp.linalg.inv(T.astype(jnp.float32))

    # in + out, double-buffered ~= 4 * tile_bytes.  Only raise the scoped VMEM
    # limit if the default (16 MiB on v5e) could be exceeded; cap well under
    # v7x's 64 MiB physical VMEM.
    vmem_limit = None
    if 4 * tile_bytes > 12 * 1024 * 1024:
        vmem_limit = min(4 * tile_bytes + (2 << 20), 48 * 1024 * 1024)

    out = pl.pallas_call(
        _warp_kernel,
        out_shape=jax.ShapeDtypeStruct((B, 3, R, L), jnp.float32),
        grid=(B, R // TR),
        in_specs=[
            pl.BlockSpec((1, 4, 4), lambda b, n: (b, 0, 0),
                         memory_space=pltpu.MemorySpace.SMEM),
            pl.BlockSpec((1, 3, TR, L), lambda b, n: (b, 0, n, 0)),
        ],
        out_specs=pl.BlockSpec((1, 3, TR, L), lambda b, n: (b, 0, n, 0)),
        compiler_params=pltpu.CompilerParams(
            dimension_semantics=("parallel", "parallel"),
            vmem_limit_bytes=vmem_limit),
    )(t_inv, pc)

    return out.reshape(B, 3, H, W)


def _reference(bev_pc, T):
    """Pure-JAX mirror of the PyTorch forward for verification."""
    B, _, H, W = bev_pc.shape
    ones = jnp.ones((B, 1, H, W), dtype=jnp.float32)
    hom = jnp.concatenate([bev_pc, ones], axis=1).reshape(B, 4, -1)
    out = jnp.einsum("bij,bjn->bin", jnp.linalg.inv(T), hom)
    out = out.reshape(B, 4, H, W)
    return out[:, :3, :, :] / out[:, 3:4, :, :]


def _make_inputs(key, B, H, W):
    k1, k2, k3 = jax.random.split(key, 3)
    bev_pc = jax.random.normal(k1, (B, 3, H, W), dtype=jnp.float32)
    # Well-conditioned homogeneous transform: T = [[R, t], [0, 0, 0, 1]].
    Rm = jnp.eye(3, dtype=jnp.float32)[None] + \
        0.05 * jax.random.normal(k2, (B, 3, 3), dtype=jnp.float32)
    t = jax.random.normal(k3, (B, 3, 1), dtype=jnp.float32)
    top = jnp.concatenate([Rm, t], axis=2)
    bottom = jnp.tile(jnp.array([[[0., 0., 0., 1.]]], jnp.float32), (B, 1, 1))
    T = jnp.concatenate([top, bottom], axis=1)
    return bev_pc, T


if __name__ == "__main__":
    key = jax.random.PRNGKey(0)
    k_a, k_b = jax.random.split(key)

    # Primary case: N = 32*32 = 1024 -> dense (R=8, L=128) slab layout.
    bev_pc, T = _make_inputs(k_a, B=2, H=32, W=32)
    out = jax.block_until_ready(coordinate_warper(bev_pc, T))
    ref = _reference(bev_pc, T)
    np.testing.assert_allclose(np.asarray(out), np.asarray(ref),
                               rtol=1e-5, atol=1e-5)

    # Second small case: N = 16*16 = 256 -> (R=1, L=256) layout.
    bev_pc2, T2 = _make_inputs(k_b, B=2, H=16, W=16)
    out2 = jax.block_until_ready(coordinate_warper(bev_pc2, T2))
    ref2 = _reference(bev_pc2, T2)
    np.testing.assert_allclose(np.asarray(out2), np.asarray(ref2),
                               rtol=1e-5, atol=1e-5)

    print("KERNEL_OK")
</pallas_src>

<mosaic_0001>
module attributes {stable_mosaic.version = 11 : i64} {
  func.func @_warp_kernel(%arg0: i32, %arg1: i32, %arg2: memref<1x4x4xf32, #tpu.memory_space<smem>>, %arg3: memref<1x3x8x128xf32, #tpu.memory_space<vmem>>, %arg4: memref<1x3x8x128xf32, #tpu.memory_space<vmem>>) attributes {dimension_semantics = [#tpu.dimension_semantics<parallel>, #tpu.dimension_semantics<parallel>], iteration_bounds = array<i64: 2, 1>, scalar_prefetch = 0 : i64, scratch_operands = 0 : i64, tpu.core_type = #tpu.core_type<tc>, window_params = [{transform_indices = @transform_0, window_bounds = array<i64: 1, 4, 4>}, {transform_indices = @transform_1, window_bounds = array<i64: 1, 3, 8, 128>}, {transform_indices = @transform_2, window_bounds = array<i64: 1, 3, 8, 128>}]} {
    %c0 = arith.constant 0 : index
    %c0_0 = arith.constant 0 : index
    %c0_1 = arith.constant 0 : index
    %0 = memref.load %arg2[%c0, %c0_0, %c0_1] : memref<1x4x4xf32, #tpu.memory_space<smem>>
    %c0_2 = arith.constant 0 : index
    %c0_3 = arith.constant 0 : index
    %c1 = arith.constant 1 : index
    %1 = memref.load %arg2[%c0_2, %c0_3, %c1] : memref<1x4x4xf32, #tpu.memory_space<smem>>
    %c0_4 = arith.constant 0 : index
    %c0_5 = arith.constant 0 : index
    %c2 = arith.constant 2 : index
    %2 = memref.load %arg2[%c0_4, %c0_5, %c2] : memref<1x4x4xf32, #tpu.memory_space<smem>>
    %c0_6 = arith.constant 0 : index
    %c0_7 = arith.constant 0 : index
    %c3 = arith.constant 3 : index
    %3 = memref.load %arg2[%c0_6, %c0_7, %c3] : memref<1x4x4xf32, #tpu.memory_space<smem>>
    %c0_8 = arith.constant 0 : index
    %c1_9 = arith.constant 1 : index
    %c0_10 = arith.constant 0 : index
    %4 = memref.load %arg2[%c0_8, %c1_9, %c0_10] : memref<1x4x4xf32, #tpu.memory_space<smem>>
    %c0_11 = arith.constant 0 : index
    %c1_12 = arith.constant 1 : index
    %c1_13 = arith.constant 1 : index
    %5 = memref.load %arg2[%c0_11, %c1_12, %c1_13] : memref<1x4x4xf32, #tpu.memory_space<smem>>
    %c0_14 = arith.constant 0 : index
    %c1_15 = arith.constant 1 : index
    %c2_16 = arith.constant 2 : index
    %6 = memref.load %arg2[%c0_14, %c1_15, %c2_16] : memref<1x4x4xf32, #tpu.memory_space<smem>>
    %c0_17 = arith.constant 0 : index
    %c1_18 = arith.constant 1 : index
    %c3_19 = arith.constant 3 : index
    %7 = memref.load %arg2[%c0_17, %c1_18, %c3_19] : memref<1x4x4xf32, #tpu.memory_space<smem>>
    %c0_20 = arith.constant 0 : index
    %c2_21 = arith.constant 2 : index
    %c0_22 = arith.constant 0 : index
    %8 = memref.load %arg2[%c0_20, %c2_21, %c0_22] : memref<1x4x4xf32, #tpu.memory_space<smem>>
    %c0_23 = arith.constant 0 : index
    %c2_24 = arith.constant 2 : index
    %c1_25 = arith.constant 1 : index
    %9 = memref.load %arg2[%c0_23, %c2_24, %c1_25] : memref<1x4x4xf32, #tpu.memory_space<smem>>
    %c0_26 = arith.constant 0 : index
    %c2_27 = arith.constant 2 : index
    %c2_28 = arith.constant 2 : index
    %10 = memref.load %arg2[%c0_26, %c2_27, %c2_28] : memref<1x4x4xf32, #tpu.memory_space<smem>>
    %c0_29 = arith.constant 0 : index
    %c2_30 = arith.constant 2 : index
    %c3_31 = arith.constant 3 : index
    %11 = memref.load %arg2[%c0_29, %c2_30, %c3_31] : memref<1x4x4xf32, #tpu.memory_space<smem>>
    %c0_32 = arith.constant 0 : index
    %c3_33 = arith.constant 3 : index
    %c0_34 = arith.constant 0 : index
    %12 = memref.load %arg2[%c0_32, %c3_33, %c0_34] : memref<1x4x4xf32, #tpu.memory_space<smem>>
    %c0_35 = arith.constant 0 : index
    %c3_36 = arith.constant 3 : index
    %c1_37 = arith.constant 1 : index
    %13 = memref.load %arg2[%c0_35, %c3_36, %c1_37] : memref<1x4x4xf32, #tpu.memory_space<smem>>
    %c0_38 = arith.constant 0 : index
    %c3_39 = arith.constant 3 : index
    %c2_40 = arith.constant 2 : index
    %14 = memref.load %arg2[%c0_38, %c3_39, %c2_40] : memref<1x4x4xf32, #tpu.memory_space<smem>>
    %c0_41 = arith.constant 0 : index
    %c3_42 = arith.constant 3 : index
    %c3_43 = arith.constant 3 : index
    %15 = memref.load %arg2[%c0_41, %c3_42, %c3_43] : memref<1x4x4xf32, #tpu.memory_space<smem>>
    %c0_44 = arith.constant 0 : index
    %c0_45 = arith.constant 0 : index
    %c0_46 = arith.constant 0 : index
    %c0_47 = arith.constant 0 : index
    %16 = vector.load %arg3[%c0_44, %c0_45, %c0_46, %c0_47] : memref<1x3x8x128xf32, #tpu.memory_space<vmem>>, vector<1x1x8x128xf32>
    %17 = vector.shape_cast %16 : vector<1x1x8x128xf32> to vector<8x128xf32>
    %c0_48 = arith.constant 0 : index
    %c1_49 = arith.constant 1 : index
    %c0_50 = arith.constant 0 : index
    %c0_51 = arith.constant 0 : index
    %18 = vector.load %arg3[%c0_48, %c1_49, %c0_50, %c0_51] : memref<1x3x8x128xf32, #tpu.memory_space<vmem>>, vector<1x1x8x128xf32>
    %19 = vector.shape_cast %18 : vector<1x1x8x128xf32> to vector<8x128xf32>
    %c0_52 = arith.constant 0 : index
    %c2_53 = arith.constant 2 : index
    %c0_54 = arith.constant 0 : index
    %c0_55 = arith.constant 0 : index
    %20 = vector.load %arg3[%c0_52, %c2_53, %c0_54, %c0_55] : memref<1x3x8x128xf32, #tpu.memory_space<vmem>>, vector<1x1x8x128xf32>
    %21 = vector.shape_cast %20 : vector<1x1x8x128xf32> to vector<8x128xf32>
    %22 = vector.broadcast %12 : f32 to vector<8x128xf32>
    %23 = arith.mulf %22, %17 : vector<8x128xf32>
    %24 = vector.broadcast %13 : f32 to vector<8x128xf32>
    %25 = arith.mulf %24, %19 : vector<8x128xf32>
    %26 = arith.addf %23, %25 : vector<8x128xf32>
    %27 = vector.broadcast %14 : f32 to vector<8x128xf32>
    %28 = arith.mulf %27, %21 : vector<8x128xf32>
    %29 = arith.addf %26, %28 : vector<8x128xf32>
    %30 = vector.broadcast %15 : f32 to vector<8x128xf32>
    %31 = arith.addf %29, %30 : vector<8x128xf32>
    %32 = tpu.reciprocal %31 : vector<8x128xf32> -> vector<8x128xf32>
    %33 = vector.broadcast %0 : f32 to vector<8x128xf32>
    %34 = arith.mulf %33, %17 : vector<8x128xf32>
    %35 = vector.broadcast %1 : f32 to vector<8x128xf32>
    %36 = arith.mulf %35, %19 : vector<8x128xf32>
    %37 = arith.addf %34, %36 : vector<8x128xf32>
    %38 = vector.broadcast %2 : f32 to vector<8x128xf32>
    %39 = arith.mulf %38, %21 : vector<8x128xf32>
    %40 = arith.addf %37, %39 : vector<8x128xf32>
    %41 = vector.broadcast %3 : f32 to vector<8x128xf32>
    %42 = arith.addf %40, %41 : vector<8x128xf32>
    %43 = arith.mulf %42, %32 : vector<8x128xf32>
    %c0_56 = arith.constant 0 : index
    %c0_57 = arith.constant 0 : index
    %c0_58 = arith.constant 0 : index
    %c0_59 = arith.constant 0 : index
    %44 = vector.load %arg4[%c0_56, %c0_57, %c0_58, %c0_59] : memref<1x3x8x128xf32, #tpu.memory_space<vmem>>, vector<1x1x8x128xf32>
    %45 = vector.shape_cast %44 : vector<1x1x8x128xf32> to vector<8x128xf32>
    %46 = vector.shape_cast %43 : vector<8x128xf32> to vector<1x1x8x128xf32>
    tpu.vector_store %arg4[%c0_56, %c0_57, %c0_58, %c0_59], %46 {strides = array<i32>} : memref<1x3x8x128xf32, #tpu.memory_space<vmem>>, vector<1x1x8x128xf32>,
    %47 = vector.broadcast %4 : f32 to vector<8x128xf32>
    %48 = arith.mulf %47, %17 : vector<8x128xf32>
    %49 = vector.broadcast %5 : f32 to vector<8x128xf32>
    %50 = arith.mulf %49, %19 : vector<8x128xf32>
    %51 = arith.addf %48, %50 : vector<8x128xf32>
    %52 = vector.broadcast %6 : f32 to vector<8x128xf32>
    %53 = arith.mulf %52, %21 : vector<8x128xf32>
    %54 = arith.addf %51, %53 : vector<8x128xf32>
    %55 = vector.broadcast %7 : f32 to vector<8x128xf32>
    %56 = arith.addf %54, %55 : vector<8x128xf32>
    %57 = arith.mulf %56, %32 : vector<8x128xf32>
    %c0_60 = arith.constant 0 : index
    %c1_61 = arith.constant 1 : index
    %c0_62 = arith.constant 0 : index
    %c0_63 = arith.constant 0 : index
    %58 = vector.load %arg4[%c0_60, %c1_61, %c0_62, %c0_63] : memref<1x3x8x128xf32, #tpu.memory_space<vmem>>, vector<1x1x8x128xf32>
    %59 = vector.shape_cast %58 : vector<1x1x8x128xf32> to vector<8x128xf32>
    %60 = vector.shape_cast %57 : vector<8x128xf32> to vector<1x1x8x128xf32>
    tpu.vector_store %arg4[%c0_60, %c1_61, %c0_62, %c0_63], %60 {strides = array<i32>} : memref<1x3x8x128xf32, #tpu.memory_space<vmem>>, vector<1x1x8x128xf32>,
    %61 = vector.broadcast %8 : f32 to vector<8x128xf32>
    %62 = arith.mulf %61, %17 : vector<8x128xf32>
    %63 = vector.broadcast %9 : f32 to vector<8x128xf32>
    %64 = arith.mulf %63, %19 : vector<8x128xf32>
    %65 = arith.addf %62, %64 : vector<8x128xf32>
    %66 = vector.broadcast %10 : f32 to vector<8x128xf32>
    %67 = arith.mulf %66, %21 : vector<8x128xf32>
    %68 = arith.addf %65, %67 : vector<8x128xf32>
    %69 = vector.broadcast %11 : f32 to vector<8x128xf32>
    %70 = arith.addf %68, %69 : vector<8x128xf32>
    %71 = arith.mulf %70, %32 : vector<8x128xf32>
    %c0_64 = arith.constant 0 : index
    %c2_65 = arith.constant 2 : index
    %c0_66 = arith.constant 0 : index
    %c0_67 = arith.constant 0 : index
    %72 = vector.load %arg4[%c0_64, %c2_65, %c0_66, %c0_67] : memref<1x3x8x128xf32, #tpu.memory_space<vmem>>, vector<1x1x8x128xf32>
    %73 = vector.shape_cast %72 : vector<1x1x8x128xf32> to vector<8x128xf32>
    %74 = vector.shape_cast %71 : vector<8x128xf32> to vector<1x1x8x128xf32>
    tpu.vector_store %arg4[%c0_64, %c2_65, %c0_66, %c0_67], %74 {strides = array<i32>} : memref<1x3x8x128xf32, #tpu.memory_space<vmem>>, vector<1x1x8x128xf32>,
    return
  }
  func.func @transform_0(%arg0: i32, %arg1: i32) -> (i32, i32, i32) {
    %c0_i32 = arith.constant 0 : i32
    %c0_i32_0 = arith.constant 0 : i32
    %c0_i32_1 = arith.constant 0 : i32
    return %arg0, %c0_i32, %c0_i32_0 : i32, i32, i32
  }
  func.func @transform_1(%arg0: i32, %arg1: i32) -> (i32, i32, i32, i32) {
    %c0_i32 = arith.constant 0 : i32
    %c0_i32_0 = arith.constant 0 : i32
    %c0_i32_1 = arith.constant 0 : i32
    return %arg0, %c0_i32, %arg1, %c0_i32_0 : i32, i32, i32, i32
  }
  func.func @transform_2(%arg0: i32, %arg1: i32) -> (i32, i32, i32, i32) {
    %c0_i32 = arith.constant 0 : i32
    %c0_i32_0 = arith.constant 0 : i32
    %c0_i32_1 = arith.constant 0 : i32
    return %arg0, %c0_i32, %arg1, %c0_i32_0 : i32, i32, i32, i32
  }
}

</mosaic_0001>

<bundles_post_ra>
// kernel: tpu_custom_call.1
= control target key start
LH: loop header
LB: loop body
LE: loop exit
PB: predicated region body
PF: predicated region fallthrough
CT: control target
= control target key end

     0   :  { %7 = vsyncpa [#allocation5], 0  ;;  %s893_s0 = inlined_call_operand.hbm [shape: f32[2,4,4], index: 0, kind: input, shape index: {}]   ;;  %s894_s1 = inlined_call_operand.hbm [shape: f32[2,3,8,128], index: 1, kind: input, shape index: {}]   ;;  %s895_s2 = inlined_call_operand.hbm [shape: f32[2,3,8,128], index: 2, kind: output, shape index: {}]  }
   0x1   :  { %9 = vsyncpa [#allocation5 + $0x1], 0 }
   0x2   :  { %10 = vsyncpa [#allocation3], 0 }
   0x3   :  { %12 = vsyncpa [#allocation3 + $0x1], 0 }
   0x4   :  { %13 = vsyncpa [#allocation4], 0 }
   0x5   :  { %15 = vsyncpa [#allocation4 + $0x1], 0  ;;  %s701_s9 = smov 0   ;;  %s703_s10 = smov 0  }
   0x6   :  { %s705_s11 = smov 0   ;;  %s707_s12 = smov 0  }
   0x7   :  { %s709_s13 = smov 0   ;;  %s711_s14 = smov 0  }
   0x8 LB: > { %s427_s15 = sadd.s32 4294967295, %s666_s14   ;;  %s428_s16 = sadd.s32 4294967294, %s666_s14   ;;  %s666_s14 = sphi %s711_s14, %s21_s14   ;;  %s662_s13 = sphi %s709_s13, %s907_s13   ;;  %s658_s12 = sphi %s707_s12, %s906_s12   ;;  %s654_s11 = sphi %s705_s11, %s905_s11   ;;  %s650_s10 = sphi %s703_s10, %s904_s10   ;;  %s646_s9 = sphi %s701_s9, %s903_s9  }
   0x9   : > { %s33_s17 = sadd.s32 1, %s662_s13  ;;  %s40_s18 = sadd.s32 1, %s654_s11 }
   0xa   : > { %p35_p0 = scmp.ge.s32.totalorder %s33_s17, 2  ;;  %p47_p1 = scmp.ne.s32.totalorder %s654_s11, %s650_s10 }
   0xb   : > { %p48_p2 = scmp.eq.s32.totalorder %s666_s14, 0  ;;  %p53_p3 = scmp.ne.s32.totalorder %s650_s10, %s646_s9 }
   0xc   : > { %s909_s17 = smov (%p35_p0, %s33_s17), 0  ;;  %p54_p5 = scmp.eq.s32.totalorder %s427_s15, 0 }
   0xd   : > { %p742_p4 = por %p48_p2, %p47_p1  ;;  %s37_s20 = ssub.s32 %s662_s13, %s909_s17 }
   0xe   : > { %p107_p6 = scmp.eq.s32.totalorder %s427_s15, 1  ;;  %p38_p7 = scmp.eq.s32.totalorder %s37_s20, 0 }
   0xf   : > { %p748_p8 = por %p54_p5, %p53_p3  ;;  %p113_p10 = scmp.eq.s32.totalorder %s428_s16, 1 }
  0x10   : > { %p752_p9 = por %p107_p6, %p47_p1  ;;  %p430_p12 = scmp.ge.s32.totalorder %s666_s14, 2 }
  0x11   : > { %s757_s23 = scalar_select %p38_p7, %s654_s11, %s40_s18  }
  0x12   : > { %p759_p11 = por %p113_p10, %p53_p3  ;;  %p465_p13 = scmp.lt.s32.totalorder %s666_s14, 2 }
  0x13   : > { %s766_s25 = sand.u32 1, %s654_s11   ;;  %s432_s27 = sshll.u32 %s662_s13, 2 }
  0x14   : > { %s431_s26 = sshll.u32 %s766_s25, 9  ;;  %s141_s30 = scalar_lea.hbm %s893_s0, %s432_s27 }
  0x15   : > { %p775_p0 = pnand %p465_p13, %p742_p4  ;;  %s143_s4 = sshll.u32 %s141_s30, 4  ;;  %s144_s4 = int_to_ptr.hbm [resolvable:$true] %s143_s4 }
  0x16   : > { %p434_p1 = scmp.ge.s32.totalorder %s666_s14, 1  ;;  %s137_s5 = scalar_lea.smem [#allocation2], %s431_s26 }
  0x17   : > { %s134_s6 = scalar_lea.sflag [#allocation5], %s766_s25  ;;  %p171_p2 = scmp.lt.s32.totalorder %s666_s14, 3 }
  0x18   : > { %457 = dma.hbm_to_smem (!%p775_p0), %s144_s4, 64, %s137_s5, %s134_s6  }
  0x19   : > { %s444_s7 = smul.u32 24, %s766_s25  ;;  %p172_p3 = pnand %p434_p1, %p171_p2 }
  0x1a   : > { %s445_s8 = smul.u32 24, %s662_s13  ;;  %s151_s28 = scalar_lea.sflag [#allocation3], %s766_s25 }
  0x1b   : > { %s154_s19 = scalar_lea.vmem [#allocation6], %s444_s7  ;;  %s668_s29 = smov 128  }
  0x1c   : > { %s160_s18 = scalar_lea.hbm %s894_s1, %s445_s8  ;;  %s163_s20 = sshll.u32 %s154_s19, 4  ;;  %s164_s20 = int_to_ptr.vmem [resolvable:$true] %s163_s20 }
  0x1d   : > { %s161_s27 = sshll.u32 %s160_s18, 4  ;;  %s669_s26 = smov 8   ;;  %s162_s27 = int_to_ptr.hbm [resolvable:$true] %s161_s27 }
  0x1e   : > { %460 = dma.hbm_to_vmem [thread:$0]  (!%p775_p0), %s162_s27, 384, %s164_s20, %s151_s28, %s668_s29, %s668_s29, %s669_s26  }
  0x1f   : > { %175 = sbr.rel (%p172_p3) target bundleno = 86 (0x56), region = 28  ;;  %s793_s30 = sand.u32 (!%p172_p3), 1, %s650_s10  }
  0x20   : > { %s435_s4 = sshll.u32 (!%p172_p3), %s793_s30, 9  ;;  %s178_s5 = scalar_lea.sflag (!%p172_p3), [#allocation5], %s793_s30 }
  0x21   : > { %s797_s6 = scalar_lea.smem (!%p172_p3), [#allocation2], %s435_s4 }
  0x24   : > { %633 = dma.done.wait (%p748_p8), %s178_s5, 64  }
  0x25   : > { %635 = vsyncadd (%p748_p8), %s178_s5, 4294967232  ;;  %s446_s25 = smul.u32 24, %s793_s30  ;;  %s188_s3 = scalar_lea.sflag [#allocation3], %s793_s30 }
  0x27   : > { %s191_s7 = scalar_lea.vmem [#allocation6], %s446_s25 }
  0x28   : > { %637 = dma.done.wait (%p748_p8), %s188_s3, 384  }
  0x29   : > { %639 = vsyncadd (%p748_p8), %s188_s3, 4294966912 }
  0x2a   : > { %197 = sfence }
  0x2b   : > { %s811_s8 = sld [smem:[#allocation2 + %s435_s4]]  ;;  %s670_s15 = smov 1   ;;  %v235_v0 = vld [vmem:[%s191_s7] sm:$0xff]  ;;  %v437_v1 = vld [vmem:[%s191_s7 + $0x8] sm:$0xff]  ;;  %v438_v2 = vld [vmem:[%s191_s7 + $0x10] sm:$0xff] }
  0x2c   : > { %s814_s16 = sld [smem:[%s797_s6 + %s670_s15]]  ;;  %s671_s18 = smov 384  }
  0x2d   : > { %s231_s19 = sld [smem:[%s797_s6 + %s671_s18]]  ;;  %s672_s20 = smov 385  }
  0x2e   : > { %s232_s27 = sld [smem:[%s797_s6 + %s672_s20]]  ;;  %s673_s21 = smov 386  }
  0x2f   : > { %s233_s28 = sld [smem:[%s797_s6 + %s673_s21]]  ;;  %s674_s29 = smov 387  }
  0x30   : > { %s234_s26 = sld [smem:[%s797_s6 + %s674_s29]]  ;;  %s896_s4 = smov 128  }
  0x31   : > { %s822_s5 = sld [smem:[%s797_s6 + %s896_s4]]  ;;  %s676_s3 = smov 129   ;;  %v264_v12 = vstv %s811_s8 }
  0x32   : > { %s825_s15 = sld [smem:[%s797_s6 + %s676_s3]]  ;;  %s677_s18 = smov 2   ;;  %v266_v13 = vstv %s814_s16  ;;  %v265_v18 = vmul.f32 %v264_v12, %v235_v0 }
  0x33   : > { %v240_v3 = vstv %s231_s19  ;;  %s828_s20 = sld [smem:[%s797_s6 + %s677_s18]]  ;;  %s678_s21 = smov 130   ;;  %v267_v19 = vmul.f32 %v437_v1, %v266_v13 }
  0x34   : > { %v241_v4 = vmul.f32 %v240_v3, %v235_v0  ;;  %v242_v5 = vstv %s232_s27  ;;  %s831_s29 = sld [smem:[%s797_s6 + %s678_s21]]  ;;  %s679_s7 = smov 256  }
  0x35   : > { %v243_v6 = vmul.f32 %v437_v1, %v242_v5  ;;  %v245_v7 = vstv %s233_s28  ;;  %s227_s19 = sld [smem:[%s797_s6 + %s679_s7]]  ;;  %s680_s3 = smov 257   ;;  %v268_v28 = vadd.f32 %v267_v19, %v265_v18 }
  0x36   : > { %v246_v8 = vmul.f32 %v438_v2, %v245_v7  ;;  %s228_s4 = sld [smem:[%s797_s6 + %s680_s3]]  ;;  %v248_v10 = vstv %s234_s26  ;;  %s681_s18 = smov 258  }
  0x37   : > { %v244_v9 = vadd.f32 %v243_v6, %v241_v4  ;;  %s229_s27 = sld [smem:[%s797_s6 + %s681_s18]]  ;;  %v276_v15 = vstv %s822_s5  ;;  %s682_s28 = smov 3  }
  0x38   : > { %v278_v16 = vstv %s825_s15  ;;  %s841_s21 = sld [smem:[%s797_s6 + %s682_s28]]  ;;  %s683_s26 = smov 131   ;;  %v277_v21 = vmul.f32 %v276_v15, %v235_v0 }
  0x39   : > { %v247_v11 = vadd.f32 %v246_v8, %v244_v9  ;;  %v269_v20 = vstv %s828_s20  ;;  %s845_s7 = sld [smem:[%s797_s6 + %s683_s26]]  ;;  %v279_v22 = vmul.f32 %v437_v1, %v278_v16  ;;  %s684_s8 = smov 259  }
  0x3a   : > { %v281_v25 = vstv %s831_s29  ;;  %s230_s16 = sld [smem:[%s797_s6 + %s684_s8]]  ;;  %v270_v29 = vmul.f32 %v438_v2, %v269_v20  ;;  %s447_s6 = smul.u32 24, %s658_s12 }
  0x3b   : > { %v249_v14 = vadd.f32 %v248_v10, %v247_v11  ;;  %v289_v17 = vstv %s227_s19  ;;  %v280_v30 = vadd.f32 %v279_v22, %v277_v21  ;;  %v282_v31 = vmul.f32 %v438_v2, %v281_v25  ;;  %s218_s20 = scalar_lea.vmem [#allocation7], %s446_s25  ;;  %s303_s19 = scalar_lea.sflag [#allocation4], %s793_s30 }
  0x3c   : > { %v290_v23 = vmul.f32 %v289_v17, %v235_v0  ;;  %v291_v24 = vstv %s228_s4  ;;  %v271_v39 = vadd.f32 %v270_v29, %v268_v28  ;;  %s315_s15 = scalar_lea.hbm %s895_s2, %s447_s6  ;;  %s316_s29 = sshll.u32 %s218_s20, 4  ;;  %s317_s29 = int_to_ptr.vmem [resolvable:$true] %s316_s29 }
  0x3d   : > { %533 = vrcp.f32 %v249_v14  ;;  %v292_v26 = vmul.f32 %v437_v1, %v291_v24  ;;  %v294_v27 = vstv %s229_s27  ;;  %vm255_vm0 = vweird.f32 %v249_v14  ;;  %s318_s12 = sshll.u32 %s315_s15, 4  ;;  %s600_s28 = scalar_lea.hbm %s895_s2, 48  ;;  %s319_s12 = int_to_ptr.hbm [resolvable:$true] %s318_s12 }
  0x3e   : > { %v295_v33 = vmul.f32 %v438_v2, %v294_v27  ;;  %v272_v36 = vstv %s841_s21  ;;  %v259_v37 = vand.u32 2147483647, %v249_v14  ;;  %v261_v38 = vand.u32 2147483648, %v249_v14  ;;  %s594_s3 = sshra.s32 %s319_s12, 4  ;;  %s595_s3 = int_to_ptr.hbm [resolvable:$true] %s594_s3 }
  0x3f   : > { %v293_v32 = vadd.f32 %v292_v26, %v290_v23  ;;  %v283_v41 = vadd.f32 %v282_v31, %v280_v30  ;;  %v284_v43 = vstv %s845_s7  ;;  %v273_v47 = vadd.f32 %v272_v36, %v271_v39  ;;  %s596_s18 = scalar_lea.hbm %s595_s3, 24  ;;  %p601_p7 = scmp.lt.s32.totalorder %s595_s3, %s895_s2 }
  0x40   : > { %v297_v44 = vstv %s230_s16  ;;  %v262_v46 = vor.u32 1.1754944e-38, %v261_v38  ;;  %vm260_vm3 = vcmp.eq.f32.partialorder %v259_v37, 8.507059e+37  ;;  %p597_p4 = scmp.ne.s32.totalorder %s595_s3, %s596_s18  ;;  %p602_p8 = scmp.lt.s32.totalorder %s600_s28, %s596_s18 }
  0x41   : > { %v296_v42 = vadd.f32 %v295_v33, %v293_v32  ;;  %v285_v49 = vadd.f32 %v284_v43, %v283_v41 }
  0x42   : > { %p598_p5 = pnand %p597_p4, %p752_p9  ;;  %p603_p10 = por %p602_p8, %p601_p7 }
  0x43   : > { %v534_v34 = vpop.eup %533  ;;  %v298_v50 = vadd.f32 %v297_v44, %v296_v42 }
  0x44   : > { %v251_v35 = vmul.f32 %v534_v34, %v249_v14  ;;  %vm256_vm1 = vweird.f32 %v534_v34  ;;  %p599_p6 = pneg %p598_p5 }
  0x45   : > { %vm257_vm2 = vmor %vm255_vm0, %vm256_vm1 }
  0x46   : > { %v252_v40 = vsub.f32 1.0, %v251_v35  ;;  %p604_p13 = pnand %p603_p10, %p599_p6 }
  0x48   : > { %v253_v45 = vmul.f32 %v534_v34, %v252_v40 }
  0x4a   : > { %v254_v48 = vadd.f32 %v534_v34, %v253_v45 }
  0x4c   : > { %v258_v51 = vsel %vm257_vm2, %v534_v34, %v254_v48 }
  0x4d   : > { %v263_v52 = vsel %vm260_vm3, %v262_v46, %v258_v51 }
  0x4e   : > { %v274_v53 = vmul.f32 %v273_v47, %v263_v52  ;;  %v286_v54 = vmul.f32 %v285_v49, %v263_v52  ;;  %v299_v55 = vmul.f32 %v298_v50, %v263_v52 }
  0x50   : > { %275 = vst [vmem:[%s218_s20] sm:$0xff] %v274_v53 }
  0x51   : > { %439 = vst [vmem:[%s218_s20 + $0x8] sm:$0xff] %v286_v54 }
  0x52   : > { %440 = vst [vmem:[%s218_s20 + $0x10] sm:$0xff] %v299_v55 }
  0x53   : > { %607 = shalt.err (!%p604_p13)
}
  0x54   : > { %s685_s30 = smov 8   ;;  %s902_s7 = smov 128  }
  0x55   : > { %452 = dma.vmem_to_hbm [thread:$0]  (%p752_p9), %s317_s29, 384, %s319_s12, %s303_s19, %s902_s7, %s902_s7, %s685_s30  }
  0x56 PF: > { %s333_s8 = sand.u32 1, %s646_s9   ;;  %p462_p0 = pnand %p430_p12, %p759_p11 }
  0x57   : > { %s334_s16 = scalar_lea.sflag [#allocation4], %s333_s8 }
  0x58   : > { %p463_p1 = pneg %p462_p0 }
  0x5a   : > { %641 = dma.done.wait (%p463_p1), %s334_s16, 384  }
  0x5b   : > { %643 = vsyncadd (%p463_p1), %s334_s16, 4294966912  ;;  %s21_s14 = sadd.s32 1, %s666_s14   ;;  %s903_s9 = smov %s650_s10 }
  0x5c   : > { %p18_p2 = scmp.ge.s32.totalorder %s21_s14, 4   ;;  %s904_s10 = smov %s654_s11 }
  0x5d   : > { %s905_s11 = smov %s757_s23  ;;  %s906_s12 = smov %s662_s13 }
  0x5e   : > { %s907_s13 = smov %s909_s17  ;;  %20 = sbr.rel (!%p18_p2) target bundleno = 8 (0x8), region = 90 }
  0x63   :  { %340 = vsyncpa [#allocation3], 1 }
  0x64   :  { %342 = vsyncpa [#allocation3 + $0x1], 1 }
  0x65   :  { %343 = vsyncpa [#allocation4], 1 }
  0x66   :  { %345 = vsyncpa [#allocation4 + $0x1], 1 }
  0x67   :  { %346 = vsyncpa [#allocation5], 1 }
  0x68   :  { %348 = vsyncpa [#allocation5 + $0x1], 1 }

</bundles_post_ra>
